<compile_context>
chip_gen: v5e
topology: v5e:2x2
jax: 0.10.0
libtpu: 0.0.40
codegen_flags: <defaults>
</compile_context>

<pallas_src>
import jax
import jax.numpy as jnp
import numpy as np
from jax.experimental import pallas as pl
from jax.experimental.pallas import tpu as pltpu


# ----------------------------------------------------------------------------
# Pallas kernel: one MXU matmul per row tile:  out_tile = x_tile @ W_eff
# ----------------------------------------------------------------------------
def _lsi_kernel(x_ref, w_ref, o_ref):
    o_ref[...] = jnp.dot(
        x_ref[...], w_ref[...], preferred_element_type=jnp.float32
    ).astype(o_ref.dtype)


def _round_up(x, m):
    return ((x + m - 1) // m) * m


def linear_self_interaction(x, w_skip, w_f, w_si, *, tile_n=None,
                            compute_dtype=jnp.bfloat16):
    """Fused forward of LinearSelfInteraction.

    x:      (N, dim_in)   float32
    w_skip: (dim_in, dim_out)   dense matrix of skip_connection
    w_f:    (dim_in, dim_out)   dense matrix of the wrapped layer f
    w_si:   (dim_out, dim_out)  dense matrix of self_interaction
    returns (N, dim_out) in x.dtype
    """
    N, Din = x.shape
    Dout = w_skip.shape[1]

    # --- plain-JAX glue: fold the three fixed linear maps into one ----------
    w_eff = jnp.dot(w_f, w_si, precision="highest",
                    preferred_element_type=jnp.float32) + w_skip

    # Lane-dense output: pad output feature axis to a multiple of 128 so the
    # kernel issues full-width (unmasked) vector stores.
    Dpad = _round_up(Dout, 128)
    if Dpad != Dout:
        w_eff = jnp.pad(w_eff, ((0, 0), (0, Dpad - Dout)))

    # bf16 operands (f32 accumulation inside the kernel), f32 output.
    xw = x.astype(compute_dtype)
    ww = w_eff.astype(compute_dtype)

    # Row tiling: big enough to amortize per-step overhead, small enough that
    # double-buffered x/out tiles fit v5e's 16 MiB scoped-VMEM default.
    if tile_n is None:
        tile_n = min(N, 4096)
    grid = (pl.cdiv(N, tile_n),)

    out_padded = pl.pallas_call(
        _lsi_kernel,
        out_shape=jax.ShapeDtypeStruct((N, Dpad), x.dtype),
        grid_spec=pltpu.PrefetchScalarGridSpec(
            num_scalar_prefetch=0,
            grid=grid,
            in_specs=[
                pl.BlockSpec((tile_n, Din), lambda i: (i, 0)),
                # Constant index_map: weight tile fetched once, stays resident.
                pl.BlockSpec((Din, Dpad), lambda i: (0, 0)),
            ],
            out_specs=pl.BlockSpec((tile_n, Dpad), lambda i: (i, 0)),
        ),
        compiler_params=pltpu.CompilerParams(
            dimension_semantics=("parallel",),
        ),
    )(xw, ww)

    # Drop the lane padding (layout plumbing; XLA fuses with the consumer).
    return out_padded[:, :Dout]


# ----------------------------------------------------------------------------
# Parameter construction (plain-JAX glue): dense matrix equivalent of
# e3nn o3.Linear for given irreps (list of (multiplicity, l) tuples).
# ----------------------------------------------------------------------------
def irreps_dim(irreps):
    return sum(mul * (2 * l + 1) for mul, l in irreps)


def make_o3_linear_dense(key, irreps_in, irreps_out):
    """Dense (dim_in, dim_out) matrix for o3.Linear with weights ~ N(0,1)
    per matching-l path, scaled by 1/sqrt(mul_in) (e3nn normalization).
    Features of each irrep are laid out as (mul, 2l+1) flattened."""
    Din, Dout = irreps_dim(irreps_in), irreps_dim(irreps_out)
    W = jnp.zeros((Din, Dout), jnp.float32)

    in_offsets = []
    off = 0
    for mul, l in irreps_in:
        in_offsets.append((off, mul, l))
        off += mul * (2 * l + 1)

    keys = jax.random.split(key, len(irreps_out))
    out_off = 0
    for (mul_out, l_out), k in zip(irreps_out, keys):
        d = 2 * l_out + 1
        for in_off, mul_in, l_in in in_offsets:
            if l_in != l_out:
                continue
            w = jax.random.normal(k, (mul_in, mul_out), jnp.float32)
            w = w / jnp.sqrt(jnp.float32(mul_in))
            # block[i*d + m, o*d + m'] = w[i, o] * delta(m, m')
            block = jnp.einsum("io,mn->imon", w, jnp.eye(d, dtype=jnp.float32))
            block = block.reshape(mul_in * d, mul_out * d)
            W = W.at[in_off:in_off + mul_in * d,
                     out_off:out_off + mul_out * d].set(block)
        out_off += mul_out * d
    return W


# ----------------------------------------------------------------------------
if __name__ == "__main__":
    # irreps_in = "4x0e + 4x1o" (dim 16), irreps_out = "8x0e + 8x1o" (dim 32)
    irreps_in = [(4, 0), (4, 1)]
    irreps_out = [(8, 0), (8, 1)]
    Din, Dout = irreps_dim(irreps_in), irreps_dim(irreps_out)

    key = jax.random.PRNGKey(0)
    k_x, k_skip, k_f, k_si, k_x2 = jax.random.split(key, 5)

    w_skip = make_o3_linear_dense(k_skip, irreps_in, irreps_out)   # skip_connection
    w_f = make_o3_linear_dense(k_f, irreps_in, irreps_out)         # wrapped layer f
    w_si = make_o3_linear_dense(k_si, irreps_out, irreps_out)      # self_interaction

    def ref_forward(xa):
        # float64 host reference of the original (unfolded) module forward
        x64 = np.asarray(xa, np.float64)
        wsk = np.asarray(w_skip, np.float64)
        wf = np.asarray(w_f, np.float64)
        wsi = np.asarray(w_si, np.float64)
        return (x64 @ wf) @ wsi + x64 @ wsk

    # --- main test: multi-step parallel grid (2048 rows, 256-row tiles) -----
    N = 2048
    x = jax.random.normal(k_x, (N, Din), jnp.float32)
    out = linear_self_interaction(x, w_skip, w_f, w_si, tile_n=256)
    out = jax.block_until_ready(out)
    assert out.shape == (N, Dout) and out.dtype == x.dtype
    np.testing.assert_allclose(np.asarray(out, np.float64), ref_forward(x),
                               rtol=5e-2, atol=5e-2)

    # --- ragged test: N not a multiple of tile_n (masked tail tile) ---------
    N2 = 1000
    x2 = jax.random.normal(k_x2, (N2, Din), jnp.float32)
    out2 = linear_self_interaction(x2, w_skip, w_f, w_si, tile_n=256)
    out2 = jax.block_until_ready(out2)
    assert out2.shape == (N2, Dout)
    np.testing.assert_allclose(np.asarray(out2, np.float64), ref_forward(x2),
                               rtol=5e-2, atol=5e-2)

    print("KERNEL_OK")
</pallas_src>

<mosaic_0001>
module attributes {stable_mosaic.version = 11 : i64} {
  func.func @_lsi_kernel(%arg0: i32, %arg1: memref<256x16xbf16, #tpu.memory_space<vmem>>, %arg2: memref<16x128xbf16, #tpu.memory_space<vmem>>, %arg3: memref<256x128xf32, #tpu.memory_space<vmem>>) attributes {dimension_semantics = [#tpu.dimension_semantics<parallel>], iteration_bounds = array<i64: 8>, scalar_prefetch = 0 : i64, scratch_operands = 0 : i64, tpu.core_type = #tpu.core_type<tc>, window_params = [{transform_indices = @transform_0, window_bounds = array<i64: 256, 16>}, {pipeline_mode = #tpu.pipeline_mode<synchronous>, transform_indices = @transform_1, window_bounds = array<i64: 16, 128>}, {transform_indices = @transform_2, window_bounds = array<i64: 256, 128>}]} {
    %c0 = arith.constant 0 : index
    %c0_0 = arith.constant 0 : index
    %0 = vector.load %arg1[%c0, %c0_0] : memref<256x16xbf16, #tpu.memory_space<vmem>>, vector<256x16xbf16>
    %c0_1 = arith.constant 0 : index
    %c0_2 = arith.constant 0 : index
    %1 = vector.load %arg2[%c0_1, %c0_2] : memref<16x128xbf16, #tpu.memory_space<vmem>>, vector<16x128xbf16>
    %cst = arith.constant dense<0.000000e+00> : vector<256x128xf32>
    %2 = tpu.matmul %0, %1, %cst {dimension_numbers = #tpu.dot_dimension_numbers<[1], [0], [0], [1], [0, 0, 1, 1], [], []>} : vector<256x16xbf16>, vector<16x128xbf16>, vector<256x128xf32> -> vector<256x128xf32>
    %c0_3 = arith.constant 0 : index
    %c0_4 = arith.constant 0 : index
    %3 = vector.load %arg3[%c0_3, %c0_4] : memref<256x128xf32, #tpu.memory_space<vmem>>, vector<256x128xf32>
    tpu.vector_store %arg3[%c0_3, %c0_4], %2 {strides = array<i32>} : memref<256x128xf32, #tpu.memory_space<vmem>>, vector<256x128xf32>,
    return
  }
  func.func @transform_0(%arg0: i32) -> (i32, i32) {
    %c0_i32 = arith.constant 0 : i32
    %c0_i32_0 = arith.constant 0 : i32
    return %arg0, %c0_i32 : i32, i32
  }
  func.func @transform_1(%arg0: i32) -> (i32, i32) {
    %c0_i32 = arith.constant 0 : i32
    %c0_i32_0 = arith.constant 0 : i32
    %c0_i32_1 = arith.constant 0 : i32
    return %c0_i32, %c0_i32_0 : i32, i32
  }
  func.func @transform_2(%arg0: i32) -> (i32, i32) {
    %c0_i32 = arith.constant 0 : i32
    %c0_i32_0 = arith.constant 0 : i32
    return %arg0, %c0_i32 : i32, i32
  }
}

</mosaic_0001>

<bundles_post_ra>
// kernel: tpu_custom_call.1
= control target key start
LH: loop header
LB: loop body
LE: loop exit
PB: predicated region body
PF: predicated region fallthrough
CT: control target
= control target key end

     0   :  { %7 = vsyncpa [#allocation3], 0  ;;  %s895_s0 = inlined_call_operand.vmem [shape: bf16[2048,16], index: 0, kind: input, shape index: {}]   ;;  %s896_s1 = inlined_call_operand.vmem [shape: bf16[16,128], index: 1, kind: input, shape index: {}]   ;;  %s897_s2 = inlined_call_operand.hbm [shape: f32[2048,128], index: 2, kind: output, shape index: {}]  }
   0x1   :  { %9 = vsyncpa [#allocation3 + $0x1], 0  ;;  %s753_s9 = smov 0   ;;  %s755_s10 = smov 0  }
   0x2   :  { %s757_s11 = smov 0   ;;  %s759_s12 = smov 0  }
   0x3 LB: > { %s774_s13 = sadd.s32 4294967295, %s734_s12   ;;  %s514_s14 = sadd.s32 4294967294, %s734_s12   ;;  %s734_s12 = sphi %s759_s12, %s903_s12   ;;  %s730_s11 = sphi %s757_s11, %s902_s11   ;;  %s726_s10 = sphi %s755_s10, %s901_s10   ;;  %s722_s9 = sphi %s753_s9, %s900_s9  }
   0x4   : > { %s778_s15 = sadd.s32 1, %s734_s12   ;;  %s69_s16 = sadd.s32 1, %s730_s11 }
   0x5   : > { %s66_s17 = ssub.s32 %s734_s12, %s778_s15  ;;  %p79_p0 = scmp.ne.s32.totalorder %s730_s11, %s726_s10 }
   0x6   : > { %p67_p1 = scmp.eq.s32.totalorder %s66_s17, 0  ;;  %p80_p2 = scmp.eq.s32.totalorder %s774_s13, 7 }
   0x7   : > { %p85_p3 = scmp.ne.s32.totalorder %s726_s10, %s722_s9  ;;  %p86_p4 = scmp.eq.s32.totalorder %s514_s14, 7 }
   0x8   : > { %s789_s18 = scalar_select %p67_p1, %s730_s11, %s69_s16  }
   0x9   : > { %p791_p5 = por %p80_p2, %p79_p0  ;;  %p795_p6 = por %p86_p4, %p85_p3 }
   0xa   : > { %p517_p7 = scmp.ge.s32.totalorder %s734_s12, 1  ;;  %p116_p8 = scmp.lt.s32.totalorder %s734_s12, 9 }
   0xc   : > { %p117_p9 = pnand %p517_p7, %p116_p8 }
   0xd   : > { %s519_s23 = sshll.u32 (!%p117_p9), %s774_s13, 5  ;;  %s135_s28 = sand.u32 (!%p117_p9), 1, %s726_s10  }
   0xe   : > { %120 = sbr.rel (%p117_p9) target bundleno = 218 (0xda), region = 28  ;;  %p139_p10 = scmp.lt.s32.totalorder (!%p117_p9), %s519_s23, 255 }
   0xf   : > { %s518_s29 = sshll.u32 (!%p117_p9), %s135_s28, 8  ;;  %s627_s3 = sshll.u32 (!%p117_p9), %s774_s13, 8 }
  0x10   : > { %s827_s30 = scalar_lea.vmem (!%p117_p9), [#allocation2], %s518_s29  ;;  %s448_s6 = scalar_lea.hbm (!%p117_p9), %s897_s2, %s627_s3 }
  0x11   : > { %s449_s7 = sshll.u32 (!%p117_p9), %s827_s30, 4  ;;  %s451_s8 = sshll.u32 (!%p117_p9), %s448_s6, 4  ;;  %s450_s7 = int_to_ptr.vmem [resolvable:$true] %s449_s7  ;;  %s452_s8 = int_to_ptr.hbm [resolvable:$true] %s451_s8 }
  0x12   : > { %s437_s13 = scalar_lea.sflag (!%p117_p9), [#allocation3], %s135_s28  ;;  %s686_s14 = sshra.s32 (!%p117_p9), %s452_s8, 4  ;;  %s687_s14 = int_to_ptr.hbm [resolvable:$true] %s686_s14 }
  0x13   : > { %v626_v0 = vld [vmem:[%s896_s1] sm:$0xff]  ;;  %s905_s23 = smov (!%p139_p10, %s519_s23), 255  ;;  %vm266_vm0 = vcmask 130048   ;;  %s688_s16 = scalar_lea.hbm %s687_s14, 256 }
  0x14   : > { %322 = vmatpush.bf16.msra.mxu0 %v626_v0  ;;  %628 = vmatpush.bf16.msra.mxu1 %v626_v0  ;;  %s520_s24 = sshll.u32 %s905_s23, 2  ;;  %p689_p11 = scmp.ne.s32.totalorder %s687_s14, %s688_s16 }
  0x15   : > { %629 = vmatpush.bf16.msra.mxu2 %v626_v0  ;;  %630 = vmatpush.bf16.msra.mxu3 %v626_v0  ;;  %s142_s27 = scalar_lea.vmem %s895_s0, %s520_s24  ;;  %s692_s22 = scalar_lea.hbm %s897_s2, 2048 }
  0x16   : > { %v610_v1 = vld [vmem:[%s142_s27] sm:$0xff]  ;;  %v611_v5 = vld [vmem:[%s142_s27 + $0x8] sm:$0xff]  ;;  %v612_v9 = vld [vmem:[%s142_s27 + $0x10] sm:$0xff]  ;;  %p690_p12 = pnand %p689_p11, %p791_p5  ;;  %p693_p0 = scmp.lt.s32.totalorder %s687_s14, %s897_s2 }
  0x17   : > { %v614_v2 = vld [vmem:[%s142_s27 + $0x20] sm:$0xff]  ;;  %589 = vmatmul.msk.bf16.vlgmr.msra.gmra.mxu0 %vm266_vm0, %v610_v1  ;;  %v615_v6 = vld [vmem:[%s142_s27 + $0x28] sm:$0xff]  ;;  %v616_v10 = vld [vmem:[%s142_s27 + $0x30] sm:$0xff]  ;;  %p694_p1 = scmp.lt.s32.totalorder %s692_s22, %s688_s16 }
  0x18   : > { %v618_v3 = vld [vmem:[%s142_s27 + $0x40] sm:$0xff]  ;;  %593 = vmatmul.msk.bf16.vlgmr.msra.gmra.mxu1 %vm266_vm0, %v614_v2  ;;  %v619_v7 = vld [vmem:[%s142_s27 + $0x48] sm:$0xff]  ;;  %v620_v11 = vld [vmem:[%s142_s27 + $0x50] sm:$0xff]  ;;  %p691_p13 = pneg %p690_p12 }
  0x19   : > { %v622_v4 = vld [vmem:[%s142_s27 + $0x60] sm:$0xff]  ;;  %597 = vmatmul.msk.bf16.vlgmr.msra.gmra.mxu2 %vm266_vm0, %v618_v3  ;;  %v623_v8 = vld [vmem:[%s142_s27 + $0x68] sm:$0xff]  ;;  %v624_v12 = vld [vmem:[%s142_s27 + $0x70] sm:$0xff]  ;;  %p695_p2 = por %p694_p1, %p693_p0 }
  0x1a   : > { %601 = vmatmul.msk.bf16.vlgmr.msra.gmra.mxu3 %vm266_vm0, %v622_v4  ;;  %v613_v13 = vld [vmem:[%s142_s27 + $0x18] sm:$0xff] }
  0x1b   : > { %v617_v14 = vld [vmem:[%s142_s27 + $0x38] sm:$0xff]  ;;  %p696_p3 = pnand %p695_p2, %p691_p13 }
  0x1c   : > { %v621_v15 = vld [vmem:[%s142_s27 + $0x58] sm:$0xff] }
  0x1d   : > { %v625_v16 = vld [vmem:[%s142_s27 + $0x78] sm:$0xff] }
  0x27   : > { %590 = vmatmul.msk.bf16.gmra.mxu0 %vm266_vm0, %v611_v5 }
  0x28   : > { %594 = vmatmul.msk.bf16.gmra.mxu1 %vm266_vm0, %v615_v6 }
  0x29   : > { %598 = vmatmul.msk.bf16.gmra.mxu2 %vm266_vm0, %v619_v7 }
  0x2a   : > { %602 = vmatmul.msk.bf16.gmra.mxu3 %vm266_vm0, %v623_v8 }
  0x37   : > { %591 = vmatmul.msk.bf16.gmra.mxu0 %vm266_vm0, %v612_v9 }
  0x38   : > { %595 = vmatmul.msk.bf16.gmra.mxu1 %vm266_vm0, %v616_v10 }
  0x39   : > { %599 = vmatmul.msk.bf16.gmra.mxu2 %vm266_vm0, %v620_v11 }
  0x3a   : > { %603 = vmatmul.msk.bf16.gmra.mxu3 %vm266_vm0, %v624_v12 }
  0x47   : > { %592 = vmatmul.msk.bf16.gmra.mxu0 %vm266_vm0, %v613_v13 }
  0x48   : > { %596 = vmatmul.msk.bf16.gmra.mxu1 %vm266_vm0, %v617_v14 }
  0x49   : > { %600 = vmatmul.msk.bf16.gmra.mxu2 %vm266_vm0, %v621_v15 }
  0x4a   : > { %604 = vmatmul.msk.bf16.gmra.mxu3 %vm266_vm0, %v625_v16 }
  0x94   : > { %v324_v17 = vpop.f32.mrf.mxu0 }
  0x95   : > { %v344_v18 = vpop.f32.mrf.mxu1  ;;  %404 = vst [vmem:[%s827_s30] sm:$0xff] %v324_v17 }
  0x96   : > { %412 = vst [vmem:[%s827_s30 + $0x40] sm:$0xff] %v344_v18 }
  0x9c   : > { %v364_v19 = vpop.f32.mrf.mxu2  ;;  %v326_v21 = vpop.f32.mrf.mxu0 }
  0x9d   : > { %v384_v20 = vpop.f32.mrf.mxu3  ;;  %420 = vst [vmem:[%s827_s30 + $0x80] sm:$0xff] %v364_v19  ;;  %v346_v22 = vpop.f32.mrf.mxu1 }
  0x9e   : > { %428 = vst [vmem:[%s827_s30 + $0xc0] sm:$0xff] %v384_v20 }
  0x9f   : > { %405 = vst [vmem:[%s827_s30 + $0x8] sm:$0xff] %v326_v21 }
  0xa0   : > { %413 = vst [vmem:[%s827_s30 + $0x48] sm:$0xff] %v346_v22 }
  0xa4   : > { %v366_v23 = vpop.f32.mrf.mxu2  ;;  %v329_v25 = vpop.f32.mrf.mxu0 }
  0xa5   : > { %v386_v24 = vpop.f32.mrf.mxu3  ;;  %421 = vst [vmem:[%s827_s30 + $0x88] sm:$0xff] %v366_v23  ;;  %v349_v26 = vpop.f32.mrf.mxu1 }
  0xa6   : > { %429 = vst [vmem:[%s827_s30 + $0xc8] sm:$0xff] %v386_v24 }
  0xa7   : > { %406 = vst [vmem:[%s827_s30 + $0x10] sm:$0xff] %v329_v25 }
  0xa8   : > { %414 = vst [vmem:[%s827_s30 + $0x50] sm:$0xff] %v349_v26 }
  0xac   : > { %v369_v27 = vpop.f32.mrf.mxu2  ;;  %v331_v29 = vpop.f32.mrf.mxu0 }
  0xad   : > { %v389_v28 = vpop.f32.mrf.mxu3  ;;  %422 = vst [vmem:[%s827_s30 + $0x90] sm:$0xff] %v369_v27  ;;  %v351_v30 = vpop.f32.mrf.mxu1 }
  0xae   : > { %430 = vst [vmem:[%s827_s30 + $0xd0] sm:$0xff] %v389_v28 }
  0xaf   : > { %407 = vst [vmem:[%s827_s30 + $0x18] sm:$0xff] %v331_v29 }
  0xb0   : > { %415 = vst [vmem:[%s827_s30 + $0x58] sm:$0xff] %v351_v30 }
  0xb4   : > { %v371_v31 = vpop.f32.mrf.mxu2  ;;  %v334_v33 = vpop.f32.mrf.mxu0 }
  0xb5   : > { %v391_v32 = vpop.f32.mrf.mxu3  ;;  %423 = vst [vmem:[%s827_s30 + $0x98] sm:$0xff] %v371_v31  ;;  %v354_v34 = vpop.f32.mrf.mxu1 }
  0xb6   : > { %431 = vst [vmem:[%s827_s30 + $0xd8] sm:$0xff] %v391_v32 }
  0xb7   : > { %408 = vst [vmem:[%s827_s30 + $0x20] sm:$0xff] %v334_v33 }
  0xb8   : > { %416 = vst [vmem:[%s827_s30 + $0x60] sm:$0xff] %v354_v34 }
  0xbc   : > { %v374_v35 = vpop.f32.mrf.mxu2  ;;  %v336_v37 = vpop.f32.mrf.mxu0 }
  0xbd   : > { %v394_v36 = vpop.f32.mrf.mxu3  ;;  %424 = vst [vmem:[%s827_s30 + $0xa0] sm:$0xff] %v374_v35  ;;  %v356_v38 = vpop.f32.mrf.mxu1 }
  0xbe   : > { %432 = vst [vmem:[%s827_s30 + $0xe0] sm:$0xff] %v394_v36 }
  0xbf   : > { %409 = vst [vmem:[%s827_s30 + $0x28] sm:$0xff] %v336_v37 }
  0xc0   : > { %417 = vst [vmem:[%s827_s30 + $0x68] sm:$0xff] %v356_v38 }
  0xc4   : > { %v376_v39 = vpop.f32.mrf.mxu2  ;;  %v339_v41 = vpop.f32.mrf.mxu0 }
  0xc5   : > { %v396_v40 = vpop.f32.mrf.mxu3  ;;  %425 = vst [vmem:[%s827_s30 + $0xa8] sm:$0xff] %v376_v39  ;;  %v359_v42 = vpop.f32.mrf.mxu1 }
  0xc6   : > { %433 = vst [vmem:[%s827_s30 + $0xe8] sm:$0xff] %v396_v40 }
  0xc7   : > { %410 = vst [vmem:[%s827_s30 + $0x30] sm:$0xff] %v339_v41 }
  0xc8   : > { %418 = vst [vmem:[%s827_s30 + $0x70] sm:$0xff] %v359_v42 }
  0xcc   : > { %v379_v43 = vpop.f32.mrf.mxu2  ;;  %v341_v45 = vpop.f32.mrf.mxu0 }
  0xcd   : > { %v399_v44 = vpop.f32.mrf.mxu3  ;;  %426 = vst [vmem:[%s827_s30 + $0xb0] sm:$0xff] %v379_v43  ;;  %v361_v46 = vpop.f32.mrf.mxu1 }
  0xce   : > { %434 = vst [vmem:[%s827_s30 + $0xf0] sm:$0xff] %v399_v44 }
  0xcf   : > { %411 = vst [vmem:[%s827_s30 + $0x38] sm:$0xff] %v341_v45 }
  0xd0   : > { %419 = vst [vmem:[%s827_s30 + $0x78] sm:$0xff] %v361_v46 }
  0xd4   : > { %v381_v47 = vpop.f32.mrf.mxu2 }
  0xd5   : > { %v401_v48 = vpop.f32.mrf.mxu3  ;;  %427 = vst [vmem:[%s827_s30 + $0xb8] sm:$0xff] %v381_v47 }
  0xd6   : > { %435 = vst [vmem:[%s827_s30 + $0xf8] sm:$0xff] %v401_v48 }
  0xd7   : > { %699 = shalt.err (!%p696_p3)
}
  0xd8   : > { %s736_s25 = smov 128   ;;  %s737_s26 = smov 8  }
  0xd9   : > { %631 = dma.vmem_to_hbm [thread:$0]  (%p791_p5), %s450_s7, 4096, %s452_s8, %s437_s13, %s736_s25, %s736_s25, %s737_s26  }
  0xda PF: > { %p637_p4 = scmp.ge.s32.totalorder %s734_s12, 2  ;;  %s466_s27 = sand.u32 1, %s722_s9  }
  0xdb   : > { %s467_s28 = scalar_lea.sflag [#allocation3], %s466_s27 }
  0xdc   : > { %p634_p7 = pnand %p637_p4, %p795_p6 }
  0xde   : > { %p635_p8 = pneg %p634_p7 }
  0xe0   : > { %717 = dma.done.wait (%p635_p8), %s467_s28, 4096  }
  0xe1   : > { %719 = vsyncadd (%p635_p8), %s467_s28, 4294963200  ;;  %p12_p9 = scmp.ge.s32.totalorder %s778_s15, 10   ;;  %s900_s9 = smov %s726_s10 }
  0xe2   : > { %s901_s10 = smov %s730_s11  ;;  %s902_s11 = smov %s789_s18 }
  0xe3   : > { %s903_s12 = smov %s778_s15  ;;  %14 = sbr.rel (!%p12_p9) target bundleno = 3 (0x3), region = 63 }
  0xe8   :  { %473 = vsyncpa [#allocation3], 1 }
  0xe9   :  { %475 = vsyncpa [#allocation3 + $0x1], 1 }

</bundles_post_ra>
